<compile_context>
chip_gen: v5e
topology: v5e:2x2
jax: 0.10.0
libtpu: 0.0.40
codegen_flags: <defaults>
</compile_context>

<pallas_src>
import functools

import jax
import jax.numpy as jnp
from jax.experimental import pallas as pl
from jax.experimental.pallas import tpu as pltpu


def _layernorm(y, w, b, eps=1e-5):
    # two-pass variance, matches torch.nn.LayerNorm numerics
    mu = jnp.mean(y, axis=-1, keepdims=True)
    var = jnp.mean(jnp.square(y - mu), axis=-1, keepdims=True)
    return (y - mu) * jax.lax.rsqrt(var + eps) * w + b


def encoder_layer_kernel(num_heads, head_dim, seq_len, ffn_tile, compute_dtype,
                         x_ref,                       # (1, S_pad, E) full (padded) sequence
                         wq_ref,                      # (Dh, Dh)   (out, in), shared across heads
                         wkv_ref,                     # (2*Dh, Dh) rows = [K out ; V out]
                         wo_ref, bo_ref,              # (E, E) (in,out), (1, E)
                         ln1w_ref, ln1b_ref,          # (1, E)
                         w1_ref, b1_ref,              # (E, F), (1, F)
                         w2_ref, b2_ref,              # (F, E), (1, E)
                         ln2w_ref, ln2b_ref,          # (1, E)
                         out_ref,                     # (1, TQ, E)
                         k_sc, v_sc,                  # (H, S_pad, Dh) scratch, compute dtype
                         acc_sc):                     # (TQ, E) f32 FFN accumulator
    H, Dh = num_heads, head_dim
    cd = compute_dtype
    qi = pl.program_id(1)
    S_pad = x_ref.shape[1]
    TQ = out_ref.shape[1]
    E = x_ref.shape[2]
    scale = 1.0 / (Dh ** 0.5)

    def split_heads(a):  # (rows, E) -> (H, rows, Dh) via static lane slices
        return jnp.stack([a[:, h * Dh:(h + 1) * Dh] for h in range(H)], axis=0)

    # ---- K/V projection for the whole sequence: once per batch element ----
    @pl.when(qi == 0)
    def _project_kv():
        xh = split_heads(x_ref[0]).astype(cd)                    # (H, S_pad, Dh)
        wkv_b = jnp.broadcast_to(wkv_ref[...], (H, 2 * Dh, Dh))  # shared per-head weight
        kv = jnp.einsum('hsd,hed->hse', xh, wkv_b,
                        preferred_element_type=jnp.float32)      # (H, S_pad, 2*Dh)
        k_sc[...] = kv[:, :, 0:Dh].astype(k_sc.dtype)
        v_sc[...] = kv[:, :, Dh:2 * Dh].astype(v_sc.dtype)

    # ---- Q projection for this row tile only (each row projected exactly once) ----
    row0 = pl.multiple_of(qi * TQ, TQ)
    xq = x_ref[0, pl.ds(row0, TQ), :]                            # (TQ, E) residual rows
    wq_b = jnp.broadcast_to(wq_ref[...], (H, Dh, Dh))
    qh = jnp.einsum('hsd,hed->hse', split_heads(xq).astype(cd), wq_b,
                    preferred_element_type=jnp.float32).astype(cd)   # (H, TQ, Dh)

    # ---- attention: head-batched scores -> softmax -> context ----
    kh = k_sc[...]
    vh = v_sc[...]
    s = jnp.einsum('hqd,hkd->hqk', qh, kh,
                   preferred_element_type=jnp.float32) * scale   # (H, TQ, S_pad)
    if S_pad > seq_len:  # static: mask padded key columns out of the softmax
        key_idx = jax.lax.broadcasted_iota(jnp.int32, (H, TQ, S_pad), 2)
        s = jnp.where(key_idx < seq_len, s, -1e30)
    s = s - jnp.max(s, axis=-1, keepdims=True)
    p = jnp.exp(s)
    denom = jnp.sum(p, axis=-1, keepdims=True)
    # approx=True would route to the EUP for production; exact here for the 1e-4 test.
    p = p * pl.reciprocal(denom, approx=False)
    ctx = jnp.einsum('hqk,hkd->hqd', p.astype(cd), vh,
                     preferred_element_type=jnp.float32)         # (H, TQ, Dh)

    concat = jnp.concatenate([ctx[h] for h in range(H)], axis=-1)   # (TQ, E)
    attn = jnp.dot(concat.astype(cd), wo_ref[...],
                   preferred_element_type=jnp.float32) + bo_ref[0]

    # ---- residual + norm1 (f32) ----
    out1 = _layernorm(xq.astype(jnp.float32) + attn, ln1w_ref[0], ln1b_ref[0])

    # ---- FFN, chunked over F, accumulated into a VMEM scratch ref ----
    F = w1_ref.shape[1]
    out1_cd = out1.astype(cd)
    first = True
    for f0 in range(0, F, ffn_tile):                             # static, unrolled chunks
        f1 = f0 + ffn_tile
        h1 = jnp.dot(out1_cd, w1_ref[:, f0:f1],
                     preferred_element_type=jnp.float32) + b1_ref[0, f0:f1]
        h1 = jnp.maximum(h1, 0.0)
        contrib = jnp.dot(h1.astype(cd), w2_ref[f0:f1, :],
                          preferred_element_type=jnp.float32)
        if first:
            acc_sc[...] = contrib
            first = False
        else:
            acc_sc[...] += contrib
    ffn = acc_sc[...] + b2_ref[0]

    out2 = _layernorm(out1 + ffn, ln2w_ref[0], ln2b_ref[0])
    out_ref[0] = out2.astype(out_ref.dtype)


def encoder_layer_pallas(x, params, num_heads, compute_dtype=jnp.float32):
    B, S, E = x.shape
    Dh = E // num_heads
    F = params["w1"].shape[0]
    cd = compute_dtype

    # ---- pad the sequence so row tiles are (sub)lane aligned ----
    if S > 128:
        S_pad = ((S + 127) // 128) * 128
        TQ = 128
    else:
        S_pad = ((S + 7) // 8) * 8
        TQ = S_pad
    NQ = S_pad // TQ
    x_in = x if S_pad == S else jnp.pad(x, ((0, 0), (0, S_pad - S), (0, 0)))

    # ---- weights: PyTorch (out,in); fuse K/V; pre-cast MXU operands to compute dtype ----
    wq = params["wq"].astype(cd)                                         # (Dh, Dh)
    wkv = jnp.concatenate([params["wk"], params["wv"]], axis=0).astype(cd)  # (2Dh, Dh)
    woT = params["wo"].T.astype(cd)                                      # (E, E)
    w1T = params["w1"].T.astype(cd)                                      # (E, F)
    w2T = params["w2"].T.astype(cd)                                      # (F, E)
    bo = params["bo"].reshape(1, E).astype(jnp.float32)
    b1 = params["b1"].reshape(1, F).astype(jnp.float32)
    b2 = params["b2"].reshape(1, E).astype(jnp.float32)
    ln1w = params["ln1_w"].reshape(1, E).astype(jnp.float32)
    ln1b = params["ln1_b"].reshape(1, E).astype(jnp.float32)
    ln2w = params["ln2_w"].reshape(1, E).astype(jnp.float32)
    ln2b = params["ln2_b"].reshape(1, E).astype(jnp.float32)

    FT = 512 if (F >= 512 and F % 512 == 0) else F                       # FFN chunk width

    def weight_spec(a):
        # constant index_map -> block stays resident across the whole grid
        # (single-buffering via pipeline_mode=pl.Buffered(1) would halve weight
        #  VMEM further on v7x; left at default for portability).
        return pl.BlockSpec(a.shape, lambda b, q: (0, 0))

    kernel = functools.partial(encoder_layer_kernel, num_heads, Dh, S, FT, cd)

    flops = 2 * B * S_pad * (3 * E * Dh + E * E + 2 * S_pad * E + 2 * E * F)
    bytes_accessed = 4 * (2 * B * S_pad * E + E * E + 2 * E * F + 3 * Dh * Dh + 3 * E + F)
    cost = pl.CostEstimate(flops=flops,
                           transcendentals=B * num_heads * S_pad * S_pad,
                           bytes_accessed=bytes_accessed)

    out = pl.pallas_call(
        kernel,
        out_shape=jax.ShapeDtypeStruct((B, S_pad, E), x.dtype),
        grid_spec=pltpu.PrefetchScalarGridSpec(
            num_scalar_prefetch=0,
            grid=(B, NQ),
            in_specs=[
                pl.BlockSpec((1, S_pad, E), lambda b, q: (b, 0, 0)),   # full sequence
                weight_spec(wq), weight_spec(wkv),
                weight_spec(woT), weight_spec(bo),
                weight_spec(ln1w), weight_spec(ln1b),
                weight_spec(w1T), weight_spec(b1),
                weight_spec(w2T), weight_spec(b2),
                weight_spec(ln2w), weight_spec(ln2b),
            ],
            out_specs=pl.BlockSpec((1, TQ, E), lambda b, q: (b, q, 0)),
            scratch_shapes=[
                pltpu.VMEM((num_heads, S_pad, Dh), cd),   # K cache (per batch element)
                pltpu.VMEM((num_heads, S_pad, Dh), cd),   # V cache
                pltpu.VMEM((TQ, E), jnp.float32),         # FFN accumulator
            ],
        ),
        compiler_params=pltpu.CompilerParams(
            # q axis must be sequential ("arbitrary") because K/V live in scratch;
            # the batch axis carries megacore sharding on v7x.
            dimension_semantics=("parallel", "arbitrary"),
        ),
        cost_estimate=cost,
    )(x_in, wq, wkv, woT, bo, ln1w, ln1b, w1T, b1, w2T, b2, ln2w, ln2b)

    return out if S_pad == S else out[:, :S, :]


# ---- pure-JAX reference (mirrors the PyTorch forward, dropout = identity) ----
def _layernorm_ref(y, w, b, eps=1e-5):
    mu = jnp.mean(y, axis=-1, keepdims=True)
    var = jnp.mean((y - mu) ** 2, axis=-1, keepdims=True)
    return (y - mu) * jax.lax.rsqrt(var + eps) * w + b


def encoder_layer_ref(x, params, num_heads):
    B, S, E = x.shape
    Dh = E // num_heads

    def linear(v, w, b=None):
        y = v @ w.T
        return y if b is None else y + b

    xh = x.reshape(B, S, num_heads, Dh)
    q = linear(xh, params["wq"]).transpose(0, 2, 1, 3)
    k = linear(xh, params["wk"]).transpose(0, 2, 1, 3)
    v = linear(xh, params["wv"]).transpose(0, 2, 1, 3)
    s = (q @ k.transpose(0, 1, 3, 2)) / (Dh ** 0.5)
    p = jax.nn.softmax(s, axis=-1)
    a = (p @ v).transpose(0, 2, 1, 3).reshape(B, S, E)
    attn = linear(a, params["wo"], params["bo"])

    out = x + attn
    out = _layernorm_ref(out, params["ln1_w"], params["ln1_b"])
    ffn = linear(jax.nn.relu(linear(out, params["w1"], params["b1"])),
                 params["w2"], params["b2"])
    out = out + ffn
    out = _layernorm_ref(out, params["ln2_w"], params["ln2_b"])
    return out


def _make_params(key, E, Dh, F, dtype=jnp.float32):
    ks = jax.random.split(key, 9)
    return {
        "wq": jax.random.normal(ks[0], (Dh, Dh), dtype) * 0.1,
        "wk": jax.random.normal(ks[1], (Dh, Dh), dtype) * 0.1,
        "wv": jax.random.normal(ks[2], (Dh, Dh), dtype) * 0.1,
        "wo": jax.random.normal(ks[3], (E, E), dtype) * 0.1,
        "bo": jax.random.normal(ks[4], (E,), dtype) * 0.1,
        "w1": jax.random.normal(ks[5], (F, E), dtype) * 0.1,
        "b1": jax.random.normal(ks[6], (F,), dtype) * 0.1,
        "w2": jax.random.normal(ks[7], (E, F), dtype) * 0.1,
        "b2": jax.random.normal(ks[8], (E,), dtype) * 0.1,
        "ln1_w": jnp.ones((E,), dtype),
        "ln1_b": jnp.zeros((E,), dtype),
        "ln2_w": jnp.ones((E,), dtype),
        "ln2_b": jnp.zeros((E,), dtype),
    }


if __name__ == "__main__":
    key = jax.random.PRNGKey(0)
    k_param, k_x1, k_x2 = jax.random.split(key, 3)

    # Test 1: small shapes (B=2, S=8, E=32, H=2, F=64) -> single q tile.
    B, S, E, H, F = 2, 8, 32, 2, 64
    params = _make_params(k_param, E, E // H, F)
    x = jax.random.normal(k_x1, (B, S, E), jnp.float32)
    out = jax.block_until_ready(encoder_layer_pallas(x, params, H))
    ref = jax.block_until_ready(encoder_layer_ref(x, params, H))
    assert out.shape == (B, S, E), out.shape
    assert jnp.allclose(out, ref, atol=1e-4, rtol=1e-4), float(jnp.max(jnp.abs(out - ref)))

    # Test 2: longer sequence (S=256 -> two 128-row q tiles) to exercise the
    # K/V-in-scratch reuse across query tiles.
    S2 = 256
    x2 = jax.random.normal(k_x2, (B, S2, E), jnp.float32)
    out2 = jax.block_until_ready(encoder_layer_pallas(x2, params, H))
    ref2 = jax.block_until_ready(encoder_layer_ref(x2, params, H))
    assert out2.shape == (B, S2, E), out2.shape
    assert jnp.allclose(out2, ref2, atol=1e-4, rtol=1e-4), float(jnp.max(jnp.abs(out2 - ref2)))

    print("KERNEL_OK")
</pallas_src>

<mosaic_0001>
module attributes {stable_mosaic.version = 11 : i64} {
  func.func @encoder_layer_kernel(%arg0: i32, %arg1: i32, %arg2: memref<1x8x32xf32, #tpu.memory_space<vmem>>, %arg3: memref<16x16xf32, #tpu.memory_space<vmem>>, %arg4: memref<32x16xf32, #tpu.memory_space<vmem>>, %arg5: memref<32x32xf32, #tpu.memory_space<vmem>>, %arg6: memref<1x32xf32, #tpu.memory_space<vmem>>, %arg7: memref<1x32xf32, #tpu.memory_space<vmem>>, %arg8: memref<1x32xf32, #tpu.memory_space<vmem>>, %arg9: memref<32x64xf32, #tpu.memory_space<vmem>>, %arg10: memref<1x64xf32, #tpu.memory_space<vmem>>, %arg11: memref<64x32xf32, #tpu.memory_space<vmem>>, %arg12: memref<1x32xf32, #tpu.memory_space<vmem>>, %arg13: memref<1x32xf32, #tpu.memory_space<vmem>>, %arg14: memref<1x32xf32, #tpu.memory_space<vmem>>, %arg15: memref<1x8x32xf32, #tpu.memory_space<vmem>>, %arg16: memref<2x8x16xf32, #tpu.memory_space<vmem>>, %arg17: memref<2x8x16xf32, #tpu.memory_space<vmem>>, %arg18: memref<8x32xf32, #tpu.memory_space<vmem>>) attributes {dimension_semantics = [#tpu.dimension_semantics<parallel>, #tpu.dimension_semantics<arbitrary>], iteration_bounds = array<i64: 2, 1>, scalar_prefetch = 0 : i64, scratch_operands = 3 : i64, tpu.core_type = #tpu.core_type<tc>, window_params = [{transform_indices = @transform_0, window_bounds = array<i64: 1, 8, 32>}, {pipeline_mode = #tpu.pipeline_mode<synchronous>, transform_indices = @transform_1, window_bounds = array<i64: 16, 16>}, {pipeline_mode = #tpu.pipeline_mode<synchronous>, transform_indices = @transform_2, window_bounds = array<i64: 32, 16>}, {pipeline_mode = #tpu.pipeline_mode<synchronous>, transform_indices = @transform_3, window_bounds = array<i64: 32, 32>}, {pipeline_mode = #tpu.pipeline_mode<synchronous>, transform_indices = @transform_4, window_bounds = array<i64: 1, 32>}, {pipeline_mode = #tpu.pipeline_mode<synchronous>, transform_indices = @transform_5, window_bounds = array<i64: 1, 32>}, {pipeline_mode = #tpu.pipeline_mode<synchronous>, transform_indices = @transform_6, window_bounds = array<i64: 1, 32>}, {pipeline_mode = #tpu.pipeline_mode<synchronous>, transform_indices = @transform_7, window_bounds = array<i64: 32, 64>}, {pipeline_mode = #tpu.pipeline_mode<synchronous>, transform_indices = @transform_8, window_bounds = array<i64: 1, 64>}, {pipeline_mode = #tpu.pipeline_mode<synchronous>, transform_indices = @transform_9, window_bounds = array<i64: 64, 32>}, {pipeline_mode = #tpu.pipeline_mode<synchronous>, transform_indices = @transform_10, window_bounds = array<i64: 1, 32>}, {pipeline_mode = #tpu.pipeline_mode<synchronous>, transform_indices = @transform_11, window_bounds = array<i64: 1, 32>}, {pipeline_mode = #tpu.pipeline_mode<synchronous>, transform_indices = @transform_12, window_bounds = array<i64: 1, 32>}, {transform_indices = @transform_13, window_bounds = array<i64: 1, 8, 32>}]} {
    %c0_i32 = arith.constant 0 : i32
    %0 = arith.cmpi eq, %arg1, %c0_i32 : i32
    %1 = arith.extui %0 : i1 to i32
    %c0_i32_0 = arith.constant 0 : i32
    %2 = arith.cmpi ne, %1, %c0_i32_0 : i32
    scf.if %2 {
      %c0_56 = arith.constant 0 : index
      %c0_57 = arith.constant 0 : index
      %c0_58 = arith.constant 0 : index
      %124 = vector.load %arg2[%c0_56, %c0_57, %c0_58] : memref<1x8x32xf32, #tpu.memory_space<vmem>>, vector<1x8x32xf32>
      %125 = vector.shape_cast %124 : vector<1x8x32xf32> to vector<8x32xf32>
      %126 = vector.extract_strided_slice %125 {offsets = [0, 0], sizes = [8, 16], strides = [1, 1]} : vector<8x32xf32> to vector<8x16xf32>
      %127 = vector.extract_strided_slice %125 {offsets = [0, 16], sizes = [8, 16], strides = [1, 1]} : vector<8x32xf32> to vector<8x16xf32>
      %128 = vector.shape_cast %126 : vector<8x16xf32> to vector<1x8x16xf32>
      %129 = vector.shape_cast %127 : vector<8x16xf32> to vector<1x8x16xf32>
      %130 = tpu.concatenate %128, %129 in 0 : vector<1x8x16xf32>, vector<1x8x16xf32> -> vector<2x8x16xf32>
      %c0_59 = arith.constant 0 : index
      %c0_60 = arith.constant 0 : index
      %131 = vector.load %arg4[%c0_59, %c0_60] : memref<32x16xf32, #tpu.memory_space<vmem>>, vector<32x16xf32>
      %132 = vector.shape_cast %131 : vector<32x16xf32> to vector<1x32x16xf32>
      %133 = vector.broadcast %132 : vector<1x32x16xf32> to vector<2x32x16xf32>
      "tpu.trace_start"() <{level = 10 : i32, message = "hsd,hed->hse"}> : () -> ()
      %cst_61 = arith.constant dense<0.000000e+00> : vector<2x8x32xf32>
      %134 = tpu.matmul %130, %133, %cst_61 {dimension_numbers = #tpu.dot_dimension_numbers<[2], [2], [1], [1], [0, 0, 0, 1, 1, 1], [0], [0]>} : vector<2x8x16xf32>, vector<2x32x16xf32>, vector<2x8x32xf32> -> vector<2x8x32xf32>
      "tpu.trace_stop"() : () -> ()
      %135 = vector.extract_strided_slice %134 {offsets = [0, 0, 0], sizes = [2, 8, 16], strides = [1, 1, 1]} : vector<2x8x32xf32> to vector<2x8x16xf32>
      %c0_62 = arith.constant 0 : index
      %c0_63 = arith.constant 0 : index
      %c0_64 = arith.constant 0 : index
      %136 = vector.load %arg16[%c0_62, %c0_63, %c0_64] : memref<2x8x16xf32, #tpu.memory_space<vmem>>, vector<2x8x16xf32>
      tpu.vector_store %arg16[%c0_62, %c0_63, %c0_64], %135 {strides = array<i32>} : memref<2x8x16xf32, #tpu.memory_space<vmem>>, vector<2x8x16xf32>,
      %137 = vector.extract_strided_slice %134 {offsets = [0, 0, 16], sizes = [2, 8, 16], strides = [1, 1, 1]} : vector<2x8x32xf32> to vector<2x8x16xf32>
      %c0_65 = arith.constant 0 : index
      %c0_66 = arith.constant 0 : index
      %c0_67 = arith.constant 0 : index
      %138 = vector.load %arg17[%c0_65, %c0_66, %c0_67] : memref<2x8x16xf32, #tpu.memory_space<vmem>>, vector<2x8x16xf32>
      tpu.vector_store %arg17[%c0_65, %c0_66, %c0_67], %137 {strides = array<i32>} : memref<2x8x16xf32, #tpu.memory_space<vmem>>, vector<2x8x16xf32>,
    } else {
    }
    %c8_i32 = arith.constant 8 : i32
    %3 = arith.muli %arg1, %c8_i32 : i32
    %4 = tpu.assume_multiple %3, 8 : i32
    %c0 = arith.constant 0 : index
    %5 = arith.index_cast %4 : i32 to index
    %c0_1 = arith.constant 0 : index
    %6 = vector.load %arg2[%c0, %5, %c0_1] : memref<1x8x32xf32, #tpu.memory_space<vmem>>, vector<1x8x32xf32>
    %7 = vector.shape_cast %6 : vector<1x8x32xf32> to vector<8x32xf32>
    %c0_2 = arith.constant 0 : index
    %c0_3 = arith.constant 0 : index
    %8 = vector.load %arg3[%c0_2, %c0_3] : memref<16x16xf32, #tpu.memory_space<vmem>>, vector<16x16xf32>
    %9 = vector.shape_cast %8 : vector<16x16xf32> to vector<1x16x16xf32>
    %10 = vector.broadcast %9 : vector<1x16x16xf32> to vector<2x16x16xf32>
    %11 = vector.extract_strided_slice %7 {offsets = [0, 0], sizes = [8, 16], strides = [1, 1]} : vector<8x32xf32> to vector<8x16xf32>
    %12 = vector.extract_strided_slice %7 {offsets = [0, 16], sizes = [8, 16], strides = [1, 1]} : vector<8x32xf32> to vector<8x16xf32>
    %13 = vector.shape_cast %11 : vector<8x16xf32> to vector<1x8x16xf32>
    %14 = vector.shape_cast %12 : vector<8x16xf32> to vector<1x8x16xf32>
    %15 = tpu.concatenate %13, %14 in 0 : vector<1x8x16xf32>, vector<1x8x16xf32> -> vector<2x8x16xf32>
    "tpu.trace_start"() <{level = 10 : i32, message = "hsd,hed->hse"}> : () -> ()
    %cst = arith.constant dense<0.000000e+00> : vector<2x8x16xf32>
    %16 = tpu.matmul %15, %10, %cst {dimension_numbers = #tpu.dot_dimension_numbers<[2], [2], [1], [1], [0, 0, 0, 1, 1, 1], [0], [0]>} : vector<2x8x16xf32>, vector<2x16x16xf32>, vector<2x8x16xf32> -> vector<2x8x16xf32>
    "tpu.trace_stop"() : () -> ()
    %c0_4 = arith.constant 0 : index
    %c0_5 = arith.constant 0 : index
    %c0_6 = arith.constant 0 : index
    %17 = vector.load %arg16[%c0_4, %c0_5, %c0_6] : memref<2x8x16xf32, #tpu.memory_space<vmem>>, vector<2x8x16xf32>
    %c0_7 = arith.constant 0 : index
    %c0_8 = arith.constant 0 : index
    %c0_9 = arith.constant 0 : index
    %18 = vector.load %arg17[%c0_7, %c0_8, %c0_9] : memref<2x8x16xf32, #tpu.memory_space<vmem>>, vector<2x8x16xf32>
    "tpu.trace_start"() <{level = 10 : i32, message = "hqd,hkd->hqk"}> : () -> ()
    %cst_10 = arith.constant dense<0.000000e+00> : vector<2x8x8xf32>
    %19 = tpu.matmul %16, %17, %cst_10 {dimension_numbers = #tpu.dot_dimension_numbers<[2], [2], [1], [1], [0, 0, 0, 1, 1, 1], [0], [0]>} : vector<2x8x16xf32>, vector<2x8x16xf32>, vector<2x8x8xf32> -> vector<2x8x8xf32>
    "tpu.trace_stop"() : () -> ()
    %cst_11 = arith.constant 2.500000e-01 : f32
    %20 = vector.broadcast %cst_11 : f32 to vector<2x8x8xf32>
    %21 = arith.mulf %19, %20 : vector<2x8x8xf32>
    %cst_12 = arith.constant dense<0xFF800000> : vector<2x8xf32>
    %22 = vector.multi_reduction <maximumf>, %21, %cst_12 [2] : vector<2x8x8xf32> to vector<2x8xf32>
    %23 = vector.shape_cast %22 : vector<2x8xf32> to vector<2x8x1xf32>
    %24 = vector.broadcast %23 : vector<2x8x1xf32> to vector<2x8x8xf32>
    %25 = arith.subf %21, %24 : vector<2x8x8xf32>
    %26 = math.exp %25 : vector<2x8x8xf32>
    %cst_13 = arith.constant dense<0.000000e+00> : vector<2x8xf32>
    %27 = vector.multi_reduction <add>, %26, %cst_13 [2] : vector<2x8x8xf32> to vector<2x8xf32>
    %28 = vector.shape_cast %27 : vector<2x8xf32> to vector<2x8x1xf32>
    %29 = tpu.reciprocal %28 : vector<2x8x1xf32> -> vector<2x8x1xf32>
    %30 = vector.broadcast %29 : vector<2x8x1xf32> to vector<2x8x8xf32>
    %31 = arith.mulf %26, %30 : vector<2x8x8xf32>
    "tpu.trace_start"() <{level = 10 : i32, message = "hqk,hkd->hqd"}> : () -> ()
    %cst_14 = arith.constant dense<0.000000e+00> : vector<2x8x16xf32>
    %32 = tpu.matmul %31, %18, %cst_14 {dimension_numbers = #tpu.dot_dimension_numbers<[2], [1], [1], [2], [0, 0, 0, 1, 1, 2], [0], [0]>} : vector<2x8x8xf32>, vector<2x8x16xf32>, vector<2x8x16xf32> -> vector<2x8x16xf32>
    "tpu.trace_stop"() : () -> ()
    %33 = vector.extract_strided_slice %32 {offsets = [0, 0, 0], sizes = [1, 8, 16], strides = [1, 1, 1]} : vector<2x8x16xf32> to vector<1x8x16xf32>
    %34 = vector.shape_cast %33 : vector<1x8x16xf32> to vector<8x16xf32>
    %35 = vector.extract_strided_slice %32 {offsets = [1, 0, 0], sizes = [1, 8, 16], strides = [1, 1, 1]} : vector<2x8x16xf32> to vector<1x8x16xf32>
    %36 = vector.shape_cast %35 : vector<1x8x16xf32> to vector<8x16xf32>
    %37 = tpu.concatenate %34, %36 in 1 : vector<8x16xf32>, vector<8x16xf32> -> vector<8x32xf32>
    %c0_15 = arith.constant 0 : index
    %c0_16 = arith.constant 0 : index
    %38 = vector.load %arg5[%c0_15, %c0_16] : memref<32x32xf32, #tpu.memory_space<vmem>>, vector<32x32xf32>
    %cst_17 = arith.constant dense<0.000000e+00> : vector<8x32xf32>
    %39 = tpu.matmul %37, %38, %cst_17 {dimension_numbers = #tpu.dot_dimension_numbers<[1], [0], [0], [1], [0, 0, 1, 1], [], []>} : vector<8x32xf32>, vector<32x32xf32>, vector<8x32xf32> -> vector<8x32xf32>
    %c0_18 = arith.constant 0 : index
    %c0_19 = arith.constant 0 : index
    %40 = vector.load %arg6[%c0_18, %c0_19] : memref<1x32xf32, #tpu.memory_space<vmem>>, vector<1x32xf32>
    %41 = vector.shape_cast %40 : vector<1x32xf32> to vector<32xf32>
    %42 = vector.shape_cast %41 : vector<32xf32> to vector<1x32xf32>
    %43 = vector.broadcast %42 : vector<1x32xf32> to vector<8x32xf32>
    %44 = arith.addf %39, %43 : vector<8x32xf32>
    %45 = arith.addf %7, %44 : vector<8x32xf32>
    %c0_20 = arith.constant 0 : index
    %c0_21 = arith.constant 0 : index
    %46 = vector.load %arg7[%c0_20, %c0_21] : memref<1x32xf32, #tpu.memory_space<vmem>>, vector<1x32xf32>
    %47 = vector.shape_cast %46 : vector<1x32xf32> to vector<32xf32>
    %c0_22 = arith.constant 0 : index
    %c0_23 = arith.constant 0 : index
    %48 = vector.load %arg8[%c0_22, %c0_23] : memref<1x32xf32, #tpu.memory_space<vmem>>, vector<1x32xf32>
    %49 = vector.shape_cast %48 : vector<1x32xf32> to vector<32xf32>
    %cst_24 = arith.constant dense<0.000000e+00> : vector<8xf32>
    %50 = vector.multi_reduction <add>, %45, %cst_24 [1] : vector<8x32xf32> to vector<8xf32>
    %51 = vector.shape_cast %50 : vector<8xf32> to vector<8x1xf32>
    %cst_25 = arith.constant 3.200000e+01 : f32
    %52 = vector.broadcast %cst_25 : f32 to vector<8x1xf32>
    %53 = arith.divf %51, %52 : vector<8x1xf32>
    %54 = vector.broadcast %53 : vector<8x1xf32> to vector<8x32xf32>
    %55 = arith.subf %45, %54 : vector<8x32xf32>
    %56 = arith.mulf %55, %55 : vector<8x32xf32>
    %cst_26 = arith.constant dense<0.000000e+00> : vector<8xf32>
    %57 = vector.multi_reduction <add>, %56, %cst_26 [1] : vector<8x32xf32> to vector<8xf32>
    %58 = vector.shape_cast %57 : vector<8xf32> to vector<8x1xf32>
    %cst_27 = arith.constant 3.200000e+01 : f32
    %59 = vector.broadcast %cst_27 : f32 to vector<8x1xf32>
    %60 = arith.divf %58, %59 : vector<8x1xf32>
    %61 = vector.broadcast %53 : vector<8x1xf32> to vector<8x32xf32>
    %62 = arith.subf %45, %61 : vector<8x32xf32>
    %cst_28 = arith.constant 9.99999974E-6 : f32
    %63 = vector.broadcast %cst_28 : f32 to vector<8x1xf32>
    %64 = arith.addf %60, %63 : vector<8x1xf32>
    %65 = math.rsqrt %64 : vector<8x1xf32>
    %66 = vector.broadcast %65 : vector<8x1xf32> to vector<8x32xf32>
    %67 = arith.mulf %62, %66 : vector<8x32xf32>
    %68 = vector.shape_cast %47 : vector<32xf32> to vector<1x32xf32>
    %69 = vector.broadcast %68 : vector<1x32xf32> to vector<8x32xf32>
    %70 = arith.mulf %67, %69 : vector<8x32xf32>
    %71 = vector.shape_cast %49 : vector<32xf32> to vector<1x32xf32>
    %72 = vector.broadcast %71 : vector<1x32xf32> to vector<8x32xf32>
    %73 = arith.addf %70, %72 : vector<8x32xf32>
    %c0_29 = arith.constant 0 : index
    %c0_30 = arith.constant 0 : index
    %74 = vector.load %arg9[%c0_29, %c0_30] : memref<32x64xf32, #tpu.memory_space<vmem>>, vector<32x64xf32>
    %cst_31 = arith.constant dense<0.000000e+00> : vector<8x64xf32>
    %75 = tpu.matmul %73, %74, %cst_31 {dimension_numbers = #tpu.dot_dimension_numbers<[1], [0], [0], [1], [0, 0, 1, 1], [], []>} : vector<8x32xf32>, vector<32x64xf32>, vector<8x64xf32> -> vector<8x64xf32>
    %c0_32 = arith.constant 0 : index
    %c0_33 = arith.constant 0 : index
    %76 = vector.load %arg10[%c0_32, %c0_33] : memref<1x64xf32, #tpu.memory_space<vmem>>, vector<1x64xf32>
    %77 = vector.shape_cast %76 : vector<1x64xf32> to vector<64xf32>
    %78 = vector.shape_cast %77 : vector<64xf32> to vector<1x64xf32>
    %79 = vector.broadcast %78 : vector<1x64xf32> to vector<8x64xf32>
    %80 = arith.addf %75, %79 : vector<8x64xf32>
    %cst_34 = arith.constant 0.000000e+00 : f32
    %81 = vector.broadcast %cst_34 : f32 to vector<8x64xf32>
    %82 = arith.maximumf %80, %81 : vector<8x64xf32>
    %c0_35 = arith.constant 0 : index
    %c0_36 = arith.constant 0 : index
    %83 = vector.load %arg11[%c0_35, %c0_36] : memref<64x32xf32, #tpu.memory_space<vmem>>, vector<64x32xf32>
    %cst_37 = arith.constant dense<0.000000e+00> : vector<8x32xf32>
    %84 = tpu.matmul %82, %83, %cst_37 {dimension_numbers = #tpu.dot_dimension_numbers<[1], [0], [0], [1], [0, 0, 1, 1], [], []>} : vector<8x64xf32>, vector<64x32xf32>, vector<8x32xf32> -> vector<8x32xf32>
    %c0_38 = arith.constant 0 : index
    %c0_39 = arith.constant 0 : index
    %85 = vector.load %arg18[%c0_38, %c0_39] : memref<8x32xf32, #tpu.memory_space<vmem>>, vector<8x32xf32>
    tpu.vector_store %arg18[%c0_38, %c0_39], %84 {strides = array<i32>} : memref<8x32xf32, #tpu.memory_space<vmem>>, vector<8x32xf32>,
    %c0_40 = arith.constant 0 : index
    %c0_41 = arith.constant 0 : index
    %86 = vector.load %arg18[%c0_40, %c0_41] : memref<8x32xf32, #tpu.memory_space<vmem>>, vector<8x32xf32>
    %c0_42 = arith.constant 0 : index
    %c0_43 = arith.constant 0 : index
    %87 = vector.load %arg12[%c0_42, %c0_43] : memref<1x32xf32, #tpu.memory_space<vmem>>, vector<1x32xf32>
    %88 = vector.shape_cast %87 : vector<1x32xf32> to vector<32xf32>
    %89 = vector.shape_cast %88 : vector<32xf32> to vector<1x32xf32>
    %90 = vector.broadcast %89 : vector<1x32xf32> to vector<8x32xf32>
    %91 = arith.addf %86, %90 : vector<8x32xf32>
    %92 = arith.addf %73, %91 : vector<8x32xf32>
    %c0_44 = arith.constant 0 : index
    %c0_45 = arith.constant 0 : index
    %93 = vector.load %arg13[%c0_44, %c0_45] : memref<1x32xf32, #tpu.memory_space<vmem>>, vector<1x32xf32>
    %94 = vector.shape_cast %93 : vector<1x32xf32> to vector<32xf32>
    %c0_46 = arith.constant 0 : index
    %c0_47 = arith.constant 0 : index
    %95 = vector.load %arg14[%c0_46, %c0_47] : memref<1x32xf32, #tpu.memory_space<vmem>>, vector<1x32xf32>
    %96 = vector.shape_cast %95 : vector<1x32xf32> to vector<32xf32>
    %cst_48 = arith.constant dense<0.000000e+00> : vector<8xf32>
    %97 = vector.multi_reduction <add>, %92, %cst_48 [1] : vector<8x32xf32> to vector<8xf32>
    %98 = vector.shape_cast %97 : vector<8xf32> to vector<8x1xf32>
    %cst_49 = arith.constant 3.200000e+01 : f32
    %99 = vector.broadcast %cst_49 : f32 to vector<8x1xf32>
    %100 = arith.divf %98, %99 : vector<8x1xf32>
    %101 = vector.broadcast %100 : vector<8x1xf32> to vector<8x32xf32>
    %102 = arith.subf %92, %101 : vector<8x32xf32>
    %103 = arith.mulf %102, %102 : vector<8x32xf32>
    %cst_50 = arith.constant dense<0.000000e+00> : vector<8xf32>
    %104 = vector.multi_reduction <add>, %103, %cst_50 [1] : vector<8x32xf32> to vector<8xf32>
    %105 = vector.shape_cast %104 : vector<8xf32> to vector<8x1xf32>
    %cst_51 = arith.constant 3.200000e+01 : f32
    %106 = vector.broadcast %cst_51 : f32 to vector<8x1xf32>
    %107 = arith.divf %105, %106 : vector<8x1xf32>
    %108 = vector.broadcast %100 : vector<8x1xf32> to vector<8x32xf32>
    %109 = arith.subf %92, %108 : vector<8x32xf32>
    %cst_52 = arith.constant 9.99999974E-6 : f32
    %110 = vector.broadcast %cst_52 : f32 to vector<8x1xf32>
    %111 = arith.addf %107, %110 : vector<8x1xf32>
    %112 = math.rsqrt %111 : vector<8x1xf32>
    %113 = vector.broadcast %112 : vector<8x1xf32> to vector<8x32xf32>
    %114 = arith.mulf %109, %113 : vector<8x32xf32>
    %115 = vector.shape_cast %94 : vector<32xf32> to vector<1x32xf32>
    %116 = vector.broadcast %115 : vector<1x32xf32> to vector<8x32xf32>
    %117 = arith.mulf %114, %116 : vector<8x32xf32>
    %118 = vector.shape_cast %96 : vector<32xf32> to vector<1x32xf32>
    %119 = vector.broadcast %118 : vector<1x32xf32> to vector<8x32xf32>
    %120 = arith.addf %117, %119 : vector<8x32xf32>
    %c0_53 = arith.constant 0 : index
    %c0_54 = arith.constant 0 : index
    %c0_55 = arith.constant 0 : index
    %121 = vector.load %arg15[%c0_53, %c0_54, %c0_55] : memref<1x8x32xf32, #tpu.memory_space<vmem>>, vector<1x8x32xf32>
    %122 = vector.shape_cast %121 : vector<1x8x32xf32> to vector<8x32xf32>
    %123 = vector.shape_cast %120 : vector<8x32xf32> to vector<1x8x32xf32>
    tpu.vector_store %arg15[%c0_53, %c0_54, %c0_55], %123 {strides = array<i32>} : memref<1x8x32xf32, #tpu.memory_space<vmem>>, vector<1x8x32xf32>,
    return
  }
  func.func @transform_0(%arg0: i32, %arg1: i32) -> (i32, i32, i32) {
    %c0_i32 = arith.constant 0 : i32
    %c0_i32_0 = arith.constant 0 : i32
    %c0_i32_1 = arith.constant 0 : i32
    return %arg0, %c0_i32, %c0_i32_0 : i32, i32, i32
  }
  func.func @transform_1(%arg0: i32, %arg1: i32) -> (i32, i32) {
    %c0_i32 = arith.constant 0 : i32
    %c0_i32_0 = arith.constant 0 : i32
    %c0_i32_1 = arith.constant 0 : i32
    return %c0_i32, %c0_i32_0 : i32, i32
  }
  func.func @transform_2(%arg0: i32, %arg1: i32) -> (i32, i32) {
    %c0_i32 = arith.constant 0 : i32
    %c0_i32_0 = arith.constant 0 : i32
    %c0_i32_1 = arith.constant 0 : i32
    return %c0_i32, %c0_i32_0 : i32, i32
  }
  func.func @transform_3(%arg0: i32, %arg1: i32) -> (i32, i32) {
    %c0_i32 = arith.constant 0 : i32
    %c0_i32_0 = arith.constant 0 : i32
    %c0_i32_1 = arith.constant 0 : i32
    return %c0_i32, %c0_i32_0 : i32, i32
  }
  func.func @transform_4(%arg0: i32, %arg1: i32) -> (i32, i32) {
    %c0_i32 = arith.constant 0 : i32
    %c0_i32_0 = arith.constant 0 : i32
    %c0_i32_1 = arith.constant 0 : i32
    return %c0_i32, %c0_i32_0 : i32, i32
  }
  func.func @transform_5(%arg0: i32, %arg1: i32) -> (i32, i32) {
    %c0_i32 = arith.constant 0 : i32
    %c0_i32_0 = arith.constant 0 : i32
    %c0_i32_1 = arith.constant 0 : i32
    return %c0_i32, %c0_i32_0 : i32, i32
  }
  func.func @transform_6(%arg0: i32, %arg1: i32) -> (i32, i32) {
    %c0_i32 = arith.constant 0 : i32
    %c0_i32_0 = arith.constant 0 : i32
    %c0_i32_1 = arith.constant 0 : i32
    return %c0_i32, %c0_i32_0 : i32, i32
  }
  func.func @transform_7(%arg0: i32, %arg1: i32) -> (i32, i32) {
    %c0_i32 = arith.constant 0 : i32
    %c0_i32_0 = arith.constant 0 : i32
    %c0_i32_1 = arith.constant 0 : i32
    return %c0_i32, %c0_i32_0 : i32, i32
  }
  func.func @transform_8(%arg0: i32, %arg1: i32) -> (i32, i32) {
    %c0_i32 = arith.constant 0 : i32
    %c0_i32_0 = arith.constant 0 : i32
    %c0_i32_1 = arith.constant 0 : i32
    return %c0_i32, %c0_i32_0 : i32, i32
  }
  func.func @transform_9(%arg0: i32, %arg1: i32) -> (i32, i32) {
    %c0_i32 = arith.constant 0 : i32
    %c0_i32_0 = arith.constant 0 : i32
    %c0_i32_1 = arith.constant 0 : i32
    return %c0_i32, %c0_i32_0 : i32, i32
  }
  func.func @transform_10(%arg0: i32, %arg1: i32) -> (i32, i32) {
    %c0_i32 = arith.constant 0 : i32
    %c0_i32_0 = arith.constant 0 : i32
    %c0_i32_1 = arith.constant 0 : i32
    return %c0_i32, %c0_i32_0 : i32, i32
  }
  func.func @transform_11(%arg0: i32, %arg1: i32) -> (i32, i32) {
    %c0_i32 = arith.constant 0 : i32
    %c0_i32_0 = arith.constant 0 : i32
    %c0_i32_1 = arith.constant 0 : i32
    return %c0_i32, %c0_i32_0 : i32, i32
  }
  func.func @transform_12(%arg0: i32, %arg1: i32) -> (i32, i32) {
    %c0_i32 = arith.constant 0 : i32
    %c0_i32_0 = arith.constant 0 : i32
    %c0_i32_1 = arith.constant 0 : i32
    return %c0_i32, %c0_i32_0 : i32, i32
  }
  func.func @transform_13(%arg0: i32, %arg1: i32) -> (i32, i32, i32) {
    %c0_i32 = arith.constant 0 : i32
    %c0_i32_0 = arith.constant 0 : i32
    return %arg0, %arg1, %c0_i32 : i32, i32, i32
  }
}

</mosaic_0001>

<bundles_post_ra>
// kernel: tpu_custom_call.1
= control target key start
LH: loop header
LB: loop body
LE: loop exit
PB: predicated region body
PF: predicated region fallthrough
CT: control target
= control target key end

     0   :  { %s1520_s0 = inlined_call_operand.vmem [shape: f32[2,8,32], index: 0, kind: input, shape index: {}]   ;;  %s1521_s1 = inlined_call_operand.vmem [shape: f32[16,16], index: 1, kind: input, shape index: {}]   ;;  %s1522_s2 = inlined_call_operand.vmem [shape: f32[32,16], index: 2, kind: input, shape index: {}]   ;;  %s1523_s3 = inlined_call_operand.vmem [shape: f32[32,32], index: 3, kind: input, shape index: {}]   ;;  %s1524_s4 = inlined_call_operand.vmem [shape: f32[1,32], index: 4, kind: input, shape index: {}]   ;;  %s1525_s5 = inlined_call_operand.vmem [shape: f32[1,32], index: 5, kind: input, shape index: {}]   ;;  %s1526_s6 = inlined_call_operand.vmem [shape: f32[1,32], index: 6, kind: input, shape index: {}]   ;;  %s1527_s7 = inlined_call_operand.vmem [shape: f32[32,64], index: 7, kind: input, shape index: {}]   ;;  %s1528_s8 = inlined_call_operand.vmem [shape: f32[1,64], index: 8, kind: input, shape index: {}]   ;;  %s1529_s9 = inlined_call_operand.vmem [shape: f32[64,32], index: 9, kind: input, shape index: {}]   ;;  %s1530_s10 = inlined_call_operand.vmem [shape: f32[1,32], index: 10, kind: input, shape index: {}]   ;;  %s1531_s11 = inlined_call_operand.vmem [shape: f32[1,32], index: 11, kind: input, shape index: {}]   ;;  %s1532_s12 = inlined_call_operand.vmem [shape: f32[1,32], index: 12, kind: input, shape index: {}]   ;;  %s1533_s13 = inlined_call_operand.hbm [shape: f32[2,8,32], index: 13, kind: output, shape index: {}]  }
   0x1   :  { %1536 = sst [smem:[#allocation10_spill]] %s1520_s0 }
   0x2   :  { %1537 = sst [smem:[#allocation11_spill]] %s1521_s1 }
   0x3   :  { %1538 = sst [smem:[#allocation12_spill]] %s1522_s2 }
   0x4   :  { %18 = vsyncpa [#allocation6], 0 }
   0x5   :  { %20 = vsyncpa [#allocation6 + $0x1], 0  ;;  %s1280_s25 = smov 0   ;;  %s1282_s26 = smov 0  }
   0x6   :  { %s1284_s27 = smov 0   ;;  %s1286_s28 = smov 0  }
   0x7   :  { %s1288_s29 = smov 0   ;;  %s1290_s30 = smov 0  }
   0x8 LB: > { %1539 = sst [smem:[#allocation8_spill]] %s1201_s29  ;;  %s1012_s14 = sadd.s32 4294967295, %s1205_s30   ;;  %s1205_s30 = sphi %s1290_s30, %s26_s30   ;;  %s1201_s29 = sphi %s1288_s29, %s1547_s29   ;;  %s1197_s28 = sphi %s1286_s28, %s1546_s28   ;;  %s1193_s27 = sphi %s1284_s27, %s1550_s27   ;;  %s1189_s26 = sphi %s1282_s26, %s1549_s26   ;;  %s1185_s25 = sphi %s1280_s25, %s1548_s25  }
   0x9   : > { %s1013_s15 = sadd.s32 4294967294, %s1205_s30   ;;  %s38_s16 = sadd.s32 1, %s1201_s29 }
   0xa   : > { %s325_s17 = sadd.s32 1, %s1193_s27  ;;  %p40_p0 = scmp.ge.s32.totalorder %s38_s16, 2 }
   0xb   : > { %p335_p1 = scmp.ne.s32.totalorder %s1193_s27, %s1189_s26  ;;  %p336_p2 = scmp.eq.s32.totalorder %s1012_s14, 1 }
   0xc   : > { %p341_p3 = scmp.ne.s32.totalorder %s1189_s26, %s1185_s25  ;;  %s1552_s16 = smov (%p40_p0, %s38_s16), 0 }
   0xd   : > { %1540 = sst [smem:[#allocation9_spill]] %s1552_s16  ;;  %p1320_p4 = por %p336_p2, %p335_p1 }
   0xe   : > { %p342_p5 = scmp.eq.s32.totalorder %s1013_s15, 1  ;;  %s320_s19 = ssub.s32 %s1201_s29, %s1552_s16 }
   0xf   : > { %p1016_p6 = scmp.ge.s32.totalorder %s1205_s30, 1  ;;  %p323_p7 = scmp.eq.s32.totalorder %s320_s19, 0 }
  0x10   : > { %p1327_p8 = por %p342_p5, %p341_p3  ;;  %p403_p9 = scmp.lt.s32.totalorder %s1205_s30, 3 }
  0x11   : > { %s1333_s21 = scalar_select %p323_p7, %s1193_s27, %s325_s17  }
  0x12   : > { %p404_p10 = pnand %p1016_p6, %p403_p9 }
  0x13   : > { %s1543_s2 = sld [smem:[#allocation12_spill]] (!%p404_p10)  ;;  %p446_p11 = scmp.lt.s32.totalorder (!%p404_p10), %s1197_s28, 1 }
  0x14   : > { %407 = sbr.rel (%p404_p10) target bundleno = 1852 (0x73c), region = 72  ;;  %s1544_s1 = sld [smem:[#allocation11_spill]] (!%p404_p10) }
  0x15   : > { %s1545_s0 = sld [smem:[#allocation10_spill]] (!%p404_p10)  ;;  %s1207_s22 = smov (!%p404_p10), 112  }
  0x16   : > { %s443_s15 = sand.u32 (!%p404_p10), 1, %s1189_s26  }
  0x17   : > { %s1017_s19 = sshll.u32 (!%p404_p10), %s443_s15, 3 }
  0x19   : > { %v461_v0 = vld [vmem:[%s1543_s2 + $0x18] sm:$0xff]  ;;  %vm462_vm0 = vcmask 130048   ;;  %v460_v1 = vld [vmem:[%s1543_s2 + $0x10] sm:$0xff]  ;;  %s447_s17 = scalar_select %p446_p11, %s1197_s28, 1  ;;  %v459_v5 = vld [vmem:[%s1543_s2 + $0x8] sm:$0xff]  ;;  %vm648_vm1 = vcmask 64512  }
  0x1a   : > { %1019 = vmatpush.xpose.msk.msra.mxu0 %vm462_vm0, %v461_v0  ;;  %v535_v2 = vld [vmem:[%s1544_s1 + $0x8] sm:$0xff]  ;;  %1024 = vmatpush.xpose.msk.msra.mxu1 %vm462_vm0, %v461_v0  ;;  %v534_v3 = vld [vmem:[%s1544_s1] sm:$0xff]  ;;  %v751_v59 = vld [vmem:[%s1523_s3 + $0x18] sm:$0xff]  ;;  %vm756_vm10 = vcmask 261120   ;;  %vm860_vm15 = vcmask 523264   ;;  %s445_s1 = scalar_lea.vmem [#allocation5], %s1017_s19 }
  0x1b   : > { %1029 = vmatpush.xpose.msk.msra.mxu2 %vm462_vm0, %v535_v2  ;;  %1032 = vmatpush.xpose.msk.msra.mxu3 %vm462_vm0, %v535_v2  ;;  %s1018_s16 = sshll.u32 %s447_s17, 3  ;;  %v458_v6 = vld [vmem:[%s1543_s2] sm:$0xff]  ;;  %v750_v60 = vld [vmem:[%s1523_s3 + $0x10] sm:$0xff]  ;;  %v749_v61 = vld [vmem:[%s1523_s3 + $0x8] sm:$0xff]  ;;  %s1147_s19 = scalar_lea.hbm %s1533_s13, 16 }
  0x1c   : > { %s449_s29 = scalar_lea.vmem %s1545_s0, %s1018_s16  ;;  %v748_v0 = vld [vmem:[%s1523_s3] sm:$0xff]  ;;  %s926_s16 = scalar_lea.sflag [#allocation6], %s443_s15 }
  0x1d   : > { %v1358_v4 = vld [vmem:[%s449_s29] sm:$0xff] }
  0x1e   : > { %1020 = vmatpush.xpose.msk.msra.mxu0 %vm462_vm0, %v460_v1  ;;  %1025 = vmatpush.xpose.msk.msra.mxu1 %vm462_vm0, %v460_v1 }
  0x1f   : > { %1030 = vmatpush.xpose.msk.msra.mxu2 %vm462_vm0, %v534_v3  ;;  %1033 = vmatpush.xpose.msk.msra.mxu3 %vm462_vm0, %v534_v3  ;;  %v1106_v3 = vld [vmem:[%s1524_s4] ss:$0 sm:$0xff] }
  0x20   : > { %456 = vrot.lane.b32.xlu0 %v1358_v4, %s1207_s22 }
  0x22   : > { %1021 = vmatpush.xpose.msk.msra.mxu0 %vm462_vm0, %v459_v5  ;;  %1031 = vmatmul.msk.f32.vlgmr.msra.gmra.mxu2 %vm462_vm0, %v1358_v4 }
  0x23   : > { %1026 = vmatpush.xpose.msk.msra.mxu1 %vm462_vm0, %v459_v5 }
  0x26   : > { %1022 = vmatpush.xpose.msk.msra.mxu0 %vm462_vm0, %v458_v6 }
  0x27   : > { %1027 = vmatpush.xpose.msk.msra.mxu1 %vm462_vm0, %v458_v6 }
  0x28   : > { %537 = vrot.lane.b32.xlu0 %v1358_v4, %s1207_s22 }
  0x29   : > { %1023 = vmatmul.msk.f32.vlgmr.msra.gmra.mxu0 %vm462_vm0, %v1358_v4 }
  0x92   : > { %v457_v7 = vpop.permute.xlu0 %456 }
  0x93   : > { %1028 = vmatmul.msk.f32.vlgmr.msra.gmra.mxu1 %vm462_vm0, %v457_v7 }
  0x9a   : > { %v538_v8 = vpop.permute.xlu0 %537 }
  0x9b   : > { %1034 = vmatmul.msk.f32.vlgmr.msra.gmra.mxu3 %vm462_vm0, %v538_v8 }
  0xa5   : > { %v565_v11 = vpop.f32.mrf.mxu2 }
  0xa6   : > { %v494_v9 = vpop.f32.mrf.mxu0 }
  0xa7   : > { %519 = vst.msk [vmem:[#allocation2] sm:$0xff] %vm462_vm0, %v494_v9  ;;  %523 = vrot.lane.b32.xlu0 %v494_v9, %s1207_s22  ;;  %v1209_v9 = vmov 32.0  }
  0xae   : > { %v590_v10 = vld [vmem:[#allocation2] sm:$0xff] }
  0xaf   : > { %1035 = vmatpush.xpose.msk.msrb.mxu2 %vm462_vm0, %v590_v10 }
  0xb2   : > { %1036 = vmatmul.msk.f32.vlgmr.msrb.gmra.mxu2 %vm462_vm0, %v565_v11 }
  0xb3   : > { %772 = vmatpush.msra.mxu2 %v751_v59 }
  0xb5   : > { %773 = vmatpush.msra.mxu2 %v750_v60 }
  0xb7   : > { %774 = vmatpush.msra.mxu2 %v749_v61 }
  0xb9   : > { %775 = vmatpush.msra.mxu2 %v748_v0 }
 0x110   : > { %v516_v12 = vpop.f32.mrf.mxu1 }
 0x111   : > { %520 = vst.msk [vmem:[#allocation2 + $0x8] sm:$0xff] %vm462_vm0, %v516_v12 }
 0x118   : > { %v591_v13 = vld [vmem:[#allocation2 + $0x8] sm:$0xff] }
 0x119   : > { %1037 = vmatpush.xpose.msk.msrb.mxu3 %vm462_vm0, %v591_v13  ;;  %v524_v14 = vpop.permute.xlu0 %523 }
 0x11a   : > { %529 = vst.msk [vmem:[#allocation3] sm:$0xff] %vm462_vm0, %v524_v14 }
 0x11e   : > { %v587_v15 = vpop.f32.mrf.mxu3 }
 0x11f   : > { %1038 = vmatmul.msk.f32.vlgmr.msrb.gmra.mxu3 %vm462_vm0, %v587_v15 }
 0x121   : > { %v592_v16 = vld [vmem:[#allocation3] sm:$0xff] }
 0x122   : > { %715 = vmatpush.msrb.mxu1 %v592_v16 }
 0x135   : > { %v617_v17 = vpop.f32.mrf.mxu2 }
 0x136   : > { %v646_v18 = vmul.f32 0.25, %v617_v17 }
 0x138   : > { %v649_v19 = vsel %vm648_vm1, %v646_v18, -inf }
 0x139   : > { %650 = vmax.xlane.f32.xlu1 %v649_v19 }
 0x1a2   : > { %v643_v20 = vpop.f32.mrf.mxu3 }
 0x1a3   : > { %v647_v21 = vmul.f32 0.25, %v643_v20  ;;  %v823_v20 = vld [vmem:[%s1527_s7 + $0x18] sm:$0xff] }
 0x1a4   : > { %843 = vmatpush.msra.mxu3 %v823_v20 }
 0x1a5   : > { %v652_v22 = vsel %vm648_vm1, %v647_v21, -inf }
 0x1a6   : > { %653 = vmax.xlane.f32.xlu1 %v652_v22  ;;  %v821_v22 = vld [vmem:[%s1527_s7 + $0x8] sm:$0xff] }
 0x1ac   : > { %v651_v23 = vpop.xlane.xlu1 %650 }
 0x1ad   : > { %v655_v24 = vsub.f32 %v646_v18, %v651_v23  ;;  %v820_v23 = vld [vmem:[%s1527_s7] sm:$0xff] }
 0x1af   : > { %v657_v25 = vmul.f32 1.442695, %v655_v24  ;;  %v859_v24 = vld [vmem:[%s1529_s9 + $0x38] sm:$0xff] }
 0x1b0   : > { %872 = vmatpush.msrb.mxu0 %v859_v24 }
 0x1b1   : > { %1113 = vpow2.f32 %v657_v25  ;;  %v858_v25 = vld [vmem:[%s1529_s9 + $0x30] sm:$0xff] }
 0x1b2   : > { %873 = vmatpush.msrb.mxu0 %v858_v25 }
 0x1b7   : > { %v1114_v26 = vpop.eup %1113 }
 0x1b8   : > { %v661_v27 = vsel %vm648_vm1, %v1114_v26, 0.0 }
 0x1b9   : > { %662 = vadd.xlane.f32.xlu2 %v661_v27 }
 0x1bf   : > { %525 = vrot.lane.b32.xlu1 %v516_v12, %s1207_s22  ;;  %s1208_s22 = smov 16  }
 0x219   : > { %v654_v28 = vpop.xlane.xlu1 %653 }
 0x21a   : > { %v656_v29 = vsub.f32 %v647_v21, %v654_v28  ;;  %v822_v21 = vld [vmem:[%s1527_s7 + $0x10] sm:$0xff] }
 0x21b   : > { %844 = vmatpush.msra.mxu3 %v822_v21 }
 0x21c   : > { %v659_v30 = vmul.f32 1.442695, %v656_v29  ;;  %v856_v29 = vld [vmem:[%s1529_s9 + $0x20] sm:$0xff] }
 0x21d   : > { %845 = vmatpush.msra.mxu3 %v821_v22 }
 0x21e   : > { %1115 = vpow2.f32 %v659_v30 }
 0x21f   : > { %846 = vmatpush.msra.mxu3 %v820_v23 }
 0x224   : > { %v1116_v31 = vpop.eup %1115 }
 0x225   : > { %v664_v32 = vsel %vm648_vm1, %v1116_v31, 0.0 }
 0x226   : > { %665 = vadd.xlane.f32.xlu2 %v664_v32 }
 0x22c   : > { %v663_v33 = vpop.xlane.xlu2 %662 }
 0x22d   : > { %1117 = vrcp.f32 %v663_v33  ;;  %v678_v38 = vand.u32 2147483648, %v663_v33  ;;  %v676_v40 = vand.u32 2147483647, %v663_v33  ;;  %vm672_vm3 = vweird.f32 %v663_v33 }
 0x22f   : > { %v679_v43 = vor.u32 1.1754944e-38, %v678_v38  ;;  %vm677_vm5 = vcmp.eq.f32.partialorder %v676_v40, 8.507059e+37  ;;  %v1107_v38 = vld [vmem:[%s1525_s5] ss:$0 sm:$0xff] }
 0x231   : > { %v526_v34 = vpop.permute.xlu1 %525 }
 0x232   : > { %530 = vst.msk [vmem:[#allocation3 + $0x8] sm:$0xff] %vm462_vm0, %v526_v34 }
 0x233   : > { %v1118_v35 = vpop.eup %1117 }
 0x234   : > { %v668_v36 = vmul.f32 %v1118_v35, %v663_v33  ;;  %vm673_vm2 = vweird.f32 %v1118_v35 }
 0x235   : > { %vm674_vm4 = vmor %vm672_vm3, %vm673_vm2 }
 0x236   : > { %v669_v37 = vsub.f32 1.0, %v668_v36 }
 0x238   : > { %v670_v39 = vmul.f32 %v1118_v35, %v669_v37 }
 0x239   : > { %v593_v41 = vld [vmem:[#allocation3 + $0x8] sm:$0xff] }
 0x23a   : > { %v671_v42 = vadd.f32 %v1118_v35, %v670_v39  ;;  %738 = vmatpush.msra.mxu1 %v593_v41  ;;  %v1108_v41 = vld [vmem:[%s1526_s6] ss:$0 sm:$0xff] }
 0x23c   : > { %v675_v44 = vsel %vm674_vm4, %v1118_v35, %v671_v42 }
 0x23d   : > { %v680_v45 = vsel %vm677_vm5, %v679_v43, %v675_v44  ;;  %v854_v44 = vld [vmem:[%s1529_s9 + $0x10] sm:$0xff] }
 0x23e   : > { %v695_v46 = vmul.f32 %v1114_v26, %v680_v45  ;;  %v857_v26 = vld [vmem:[%s1529_s9 + $0x28] sm:$0xff] }
 0x23f   : > { %874 = vmatpush.msrb.mxu0 %v857_v26  ;;  %v853_v45 = vld [vmem:[%s1529_s9 + $0x8] sm:$0xff] }
 0x240   : > { %1039 = vmatmul.msk.f32.vlgmr.msrb.gmra.mxu1 %vm648_vm1, %v695_v46  ;;  %v852_v46 = vld [vmem:[%s1529_s9] sm:$0xff] }
 0x241   : > { %875 = vmatpush.msrb.mxu0 %v856_v29 }
 0x299   : > { %v666_v47 = vpop.xlane.xlu2 %665 }
 0x29a   : > { %1119 = vrcp.f32 %v666_v47  ;;  %v692_v51 = vand.u32 2147483648, %v666_v47  ;;  %v690_v53 = vand.u32 2147483647, %v666_v47  ;;  %vm686_vm7 = vweird.f32 %v666_v47 }
 0x29b   : > { %1121 = vrcp.f32 %v1209_v9 }
 0x29c   : > { %v693_v55 = vor.u32 1.1754944e-38, %v692_v51  ;;  %vm691_vm9 = vcmp.eq.f32.partialorder %v690_v53, 8.507059e+37 }
 0x2a0   : > { %v1120_v48 = vpop.eup %1119 }
 0x2a1   : > { %v682_v49 = vmul.f32 %v1120_v48, %v666_v47  ;;  %vm687_vm6 = vweird.f32 %v1120_v48  ;;  %v1122_v10 = vpop.eup %1121  ;;  %v1109_v47 = vld [vmem:[%s1528_s8] ss:$0 sm:$0xff] }
 0x2a2   : > { %vm688_vm8 = vmor %vm686_vm7, %vm687_vm6  ;;  %v787_v11 = vmul.f32 32.0, %v1122_v10  ;;  %vm791_vm11 = vweird.f32 %v1122_v10 }
 0x2a3   : > { %v683_v50 = vsub.f32 1.0, %v682_v49 }
 0x2a4   : > { %v788_v12 = vsub.f32 1.0, %v787_v11  ;;  %v1112_v11 = vld [vmem:[%s1532_s12] ss:$0 sm:$0xff] }
 0x2a5   : > { %v684_v52 = vmul.f32 %v1120_v48, %v683_v50 }
 0x2a6   : > { %v789_v13 = vmul.f32 %v1122_v10, %v788_v12 }
 0x2a7   : > { %v685_v54 = vadd.f32 %v1120_v48, %v684_v52  ;;  %v1110_v52 = vld [vmem:[%s1530_s10] ss:$0 sm:$0xff] }
 0x2a8   : > { %v790_v14 = vadd.f32 %v1122_v10, %v789_v13 }
 0x2a9   : > { %v689_v56 = vsel %vm688_vm8, %v1120_v48, %v685_v54 }
 0x2aa   : > { %v694_v57 = vsel %vm691_vm9, %v693_v55, %v689_v56  ;;  %v1417_v15 = vsel %vm791_vm11, %v1122_v10, %v790_v14 }
 0x2ab   : > { %v696_v58 = vmul.f32 %v1116_v31, %v694_v57  ;;  %v855_v31 = vld [vmem:[%s1529_s9 + $0x18] sm:$0xff] }
 0x2ac   : > { %876 = vmatpush.msrb.mxu0 %v855_v31 }
 0x2ad   : > { %1040 = vmatmul.msk.f32.vlgmr.msra.gmra.mxu1 %vm648_vm1, %v696_v58 }
 0x2ae   : > { %877 = vmatpush.msrb.mxu0 %v854_v44 }
 0x2b0   : > { %878 = vmatpush.msrb.mxu0 %v853_v45 }
 0x2b2   : > { %879 = vmatpush.msrb.mxu0 %v852_v46 }
 0x2bd   : > { %v717_v62 = vpop.f32.mrf.mxu1 }
 0x32a   : > { %v740_v63 = vpop.f32.mrf.mxu1 }
 0x32b   : > { %744 = vrot.lane.b32.xlu2 %v740_v63, %s1208_s22  ;;  %s1045_s22 = sshll.u32 %s1197_s28, 3  ;;  %s939_s28 = sshll.u32 %s445_s1, 4  ;;  %s940_s28 = int_to_ptr.vmem [resolvable:$true] %s939_s28 }
 0x32c   : > { %s937_s23 = scalar_lea.hbm %s1533_s13, %s1045_s22 }
 0x32d   : > { %s941_s2 = sshll.u32 %s937_s23, 4  ;;  %s942_s2 = int_to_ptr.hbm [resolvable:$true] %s941_s2 }
 0x32e   : > { %s1141_s0 = sshra.s32 %s942_s2, 4  ;;  %s1142_s0 = int_to_ptr.hbm [resolvable:$true] %s1141_s0 }
 0x32f   : > { %s1143_s22 = scalar_lea.hbm %s1142_s0, 8  ;;  %p1148_p1 = scmp.lt.s32.totalorder %s1142_s0, %s1533_s13 }
 0x330   : > { %p1144_p12 = scmp.ne.s32.totalorder %s1142_s0, %s1143_s22  ;;  %p1149_p2 = scmp.lt.s32.totalorder %s1147_s19, %s1143_s22 }
 0x332   : > { %p1145_p13 = pnand %p1144_p12, %p1320_p4  ;;  %p1150_p3 = por %p1149_p2, %p1148_p1 }
 0x334   : > { %p1146_p0 = pneg %p1145_p13 }
 0x336   : > { %p1151_p5 = pnand %p1150_p3, %p1146_p0 }
 0x385   : > { %v745_v1 = vpop.permute.xlu2 %744 }
 0x386   : > { %v747_v2 = vsel %vm462_vm0, %v717_v62, %v745_v1 }
 0x387   : > { %1041 = vmatmul.msk.f32.vlgmr.msra.gmra.mxu2 %vm756_vm10, %v747_v2 }
 0x40a   : > { %v777_v5 = vpop.f32.mrf.mxu2 }
 0x40b   : > { %v778_v6 = vadd.f32 %v1106_v3, %v777_v5 }
 0x40d   : > { %v780_v7 = vadd.f32 %v778_v6, %v1358_v4 }
 0x40f   : > { %v783_v8 = vsel %vm756_vm10, %v780_v7, 0.0 }
 0x410   : > { %784 = vadd.xlane.f32.xlu0 %v783_v8  ;;  %v1111_v8 = vld [vmem:[%s1531_s11] ss:$0 sm:$0xff] }
 0x483   : > { %v785_v16 = vpop.xlane.xlu0 %784 }
 0x484   : > { %v793_v17 = vmul.f32 %v1417_v15, %v785_v16 }
 0x486   : > { %v794_v18 = vsub.f32 %v780_v7, %v793_v17 }
 0x488   : > { %v795_v19 = vmul.f32 %v794_v18, %v794_v18 }
 0x48a   : > { %v796_v4 = vsel %vm756_vm10, %v795_v19, 0.0 }
 0x48b   : > { %797 = vadd.xlane.f32.xlu2 %v796_v4 }
 0x4fe   : > { %v798_v27 = vpop.xlane.xlu2 %797 }
 0x4ff   : > { %v799_v28 = vmul.f32 %v798_v27, %v1417_v15 }
 0x501   : > { %v800_v30 = vadd.f32 1e-05, %v799_v28 }
 0x503   : > { %1123 = vrsqrt.f32 %v800_v30  ;;  %vm807_vm13 = vweird.f32 %v800_v30 }
 0x509   : > { %v1124_v32 = vpop.eup %1123 }
 0x50a   : > { %v802_v33 = vmul.f32 %v1124_v32, %v800_v30  ;;  %vm808_vm12 = vweird.f32 %v1124_v32 }
 0x50b   : > { %vm809_vm14 = vmor %vm807_vm13, %vm808_vm12 }
 0x50c   : > { %v803_v34 = vmul.f32 %v1124_v32, %v802_v33 }
 0x50e   : > { %v804_v35 = vmul.f32 0.5, %v803_v34 }
 0x510   : > { %v805_v36 = vsub.f32 1.5, %v804_v35 }
 0x512   : > { %v806_v37 = vmul.f32 %v1124_v32, %v805_v36 }
 0x514   : > { %v810_v39 = vsel %vm809_vm14, %v1124_v32, %v806_v37 }
 0x515   : > { %v811_v40 = vmul.f32 %v810_v39, %v794_v18 }
 0x517   : > { %v815_v42 = vmul.f32 %v1107_v38, %v811_v40 }
 0x519   : > { %v819_v43 = vadd.f32 %v1108_v41, %v815_v42 }
 0x51b   : > { %1042 = vmatmul.msk.f32.vlgmr.msra.gmra.mxu3 %vm756_vm10, %v819_v43 }
 0x59e   : > { %v848_v48 = vpop.f32.mrf.mxu3 }
 0x59f   : > { %v849_v49 = vadd.f32 %v1109_v47, %v848_v48 }
 0x5a1   : > { %v851_v50 = vmax.f32 %v849_v49, 0.0 }
 0x5a3   : > { %1043 = vmatmul.msk.f32.vlgmr.msrb.gmra.mxu0 %vm860_vm15, %v851_v50 }
 0x620   : > { %v881_v51 = vpop.f32.mrf.mxu0 }
 0x621   : > { %884 = vst.msk [vmem:[#allocation4] sm:$0xff] %vm756_vm10, %v881_v51 }
 0x628   : > { %v885_v53 = vld [vmem:[#allocation4] sm:$0xff] }
 0x629   : > { %v890_v54 = vadd.f32 %v1110_v52, %v885_v53 }
 0x62b   : > { %v891_v55 = vadd.f32 %v890_v54, %v819_v43 }
 0x62d   : > { %v894_v56 = vsel %vm756_vm10, %v891_v55, 0.0 }
 0x62e   : > { %895 = vadd.xlane.f32.xlu1 %v894_v56 }
 0x6a1   : > { %v896_v57 = vpop.xlane.xlu1 %895 }
 0x6a2   : > { %v897_v58 = vmul.f32 %v896_v57, %v1417_v15 }
 0x6a4   : > { %v898_v59 = vsub.f32 %v891_v55, %v897_v58 }
 0x6a6   : > { %v899_v60 = vmul.f32 %v898_v59, %v898_v59 }
 0x6a8   : > { %v900_v61 = vsel %vm756_vm10, %v899_v60, 0.0 }
 0x6a9   : > { %901 = vadd.xlane.f32.xlu0 %v900_v61 }
 0x71c   : > { %v902_v62 = vpop.xlane.xlu0 %901 }
 0x71d   : > { %v903_v63 = vmul.f32 %v902_v62, %v1417_v15 }
 0x71f   : > { %v904_v0 = vadd.f32 1e-05, %v903_v63 }
 0x721   : > { %1125 = vrsqrt.f32 %v904_v0  ;;  %vm911_vm1 = vweird.f32 %v904_v0 }
 0x727   : > { %v1126_v1 = vpop.eup %1125 }
 0x728   : > { %v906_v2 = vmul.f32 %v1126_v1, %v904_v0  ;;  %vm912_vm0 = vweird.f32 %v1126_v1 }
 0x729   : > { %vm913_vm2 = vmor %vm911_vm1, %vm912_vm0 }
 0x72a   : > { %v907_v3 = vmul.f32 %v1126_v1, %v906_v2 }
 0x72c   : > { %v908_v5 = vmul.f32 0.5, %v907_v3 }
 0x72e   : > { %v909_v6 = vsub.f32 1.5, %v908_v5 }
 0x730   : > { %v910_v7 = vmul.f32 %v1126_v1, %v909_v6 }
 0x732   : > { %v914_v9 = vsel %vm913_vm2, %v1126_v1, %v910_v7 }
 0x733   : > { %v915_v10 = vmul.f32 %v914_v9, %v898_v59 }
 0x735   : > { %v919_v12 = vmul.f32 %v1111_v8, %v915_v10 }
 0x737   : > { %v923_v13 = vadd.f32 %v1112_v11, %v919_v12 }
 0x739   : > { %924 = vst.msk [vmem:[%s445_s1] sm:$0xff] %vm756_vm10, %v923_v13 }
 0x73a   : > { %1154 = shalt.err (!%p1151_p5)
}
 0x73b   : > { %1048 = dma.vmem_to_hbm [thread:$0]  (%p1320_p4), %s940_s28, 128, %s942_s2, %s926_s16  }
 0x73c PF: > { %p1054_p6 = scmp.ge.s32.totalorder %s1205_s30, 2  ;;  %s953_s1 = sand.u32 1, %s1185_s25  }
 0x73d   : > { %s954_s15 = scalar_lea.sflag [#allocation6], %s953_s1 }
 0x73e   : > { %p1051_p7 = pnand %p1054_p6, %p1327_p8 }
 0x740   : > { %p1052_p9 = pneg %p1051_p7 }
 0x742   : > { %1180 = dma.done.wait (%p1052_p9), %s954_s15, 128  }
 0x743   : > { %1182 = vsyncadd (%p1052_p9), %s954_s15, 4294967168  ;;  %s26_s30 = sadd.s32 1, %s1205_s30   ;;  %s1546_s28 = sld [smem:[#allocation8_spill]] }
 0x744   : > { %p23_p10 = scmp.ge.s32.totalorder %s26_s30, 4   ;;  %s1547_s29 = sld [smem:[#allocation9_spill]] }
 0x745   : > { %s1548_s25 = smov %s1189_s26  ;;  %s1549_s26 = smov %s1193_s27 }
 0x746   : > { %s1550_s27 = smov %s1333_s21  ;;  %25 = sbr.rel (!%p23_p10) target bundleno = 8 (0x8), region = 112 }
 0x74b   :  { %960 = vsyncpa [#allocation6], 1 }
 0x74c   :  { %962 = vsyncpa [#allocation6 + $0x1], 1 }

</bundles_post_ra>
